<compile_context>
chip_gen: v5e
topology: v5e:2x2
jax: 0.10.0
libtpu: 0.0.40
codegen_flags: <defaults>
</compile_context>

<pallas_src>
import functools

import jax
import jax.numpy as jnp
from jax.experimental import pallas as pl
from jax.experimental.pallas import tpu as pltpu


def _round_up(n, m):
    return ((n + m - 1) // m) * m


def _cdiv(a, b):
    return (a + b - 1) // b


def _qnet_kernel(x_ref, w1_ref, b1_ref, w2_ref, b2_ref, o_ref):
    # Fused two-layer MLP on one batch tile.  Mosaic pads the small K/N dims
    # (11 / 32 / 3) inside VMEM/vregs, so the dots are fed unpadded.
    x = x_ref[...].astype(jnp.float32)
    h = jnp.dot(x, w1_ref[...].astype(jnp.float32),
                preferred_element_type=jnp.float32)
    h = jnp.maximum(h + b1_ref[...], 0.0)          # bias + ReLU in f32 on the VPU
    y = jnp.dot(h, w2_ref[...].astype(jnp.float32),
                preferred_element_type=jnp.float32)
    o_ref[...] = (y + b2_ref[...]).astype(o_ref.dtype)


@functools.partial(jax.jit, static_argnames=("block_batch",))
def linear_qnet_forward(x, w1, b1, w2, b2, *, block_batch=1024):
    """Forward pass of Linear_QNet.

    x : [B, in]        (float dtype)
    w1: [in, hid]      (torch weight transposed, so we compute x @ W)
    b1: [hid]
    w2: [hid, out]
    b2: [out]
    returns [B, out] in x.dtype
    """
    B, in_size = x.shape
    hid = w1.shape[1]
    out_size = w2.shape[1]

    # --- batch tiling only (feature dims stay unpadded) ---------------------
    b8 = _round_up(max(B, 1), 8)
    num_tiles = _cdiv(b8, block_batch)
    # Keep >=2 grid steps for large batches so the "parallel" batch axis can
    # shard across both TensorCores on v7x.  Small batches stay grid=(1,).
    if num_tiles == 1 and b8 >= 512:
        num_tiles = 2
    TB = _round_up(_cdiv(b8, num_tiles), 8)        # balanced tiles, minimal waste
    B_P = TB * num_tiles

    xp = x if B_P == B else jnp.pad(x, ((0, B_P - B), (0, 0)))
    b1r = b1.reshape(1, hid).astype(jnp.float32)
    b2r = b2.reshape(1, out_size).astype(jnp.float32)

    y = pl.pallas_call(
        _qnet_kernel,
        out_shape=jax.ShapeDtypeStruct((B_P, out_size), x.dtype),
        grid=(num_tiles,),
        in_specs=[
            pl.BlockSpec((TB, in_size), lambda i: (i, 0)),     # x tile, pipelined, unpadded
            pl.BlockSpec((in_size, hid), lambda i: (0, 0)),    # weights resident in VMEM
            pl.BlockSpec((1, hid), lambda i: (0, 0)),
            pl.BlockSpec((hid, out_size), lambda i: (0, 0)),
            pl.BlockSpec((1, out_size), lambda i: (0, 0)),
        ],
        out_specs=pl.BlockSpec((TB, out_size), lambda i: (i, 0)),
        compiler_params=pltpu.CompilerParams(
            dimension_semantics=("parallel",),                 # megacore on v7x
        ),
    )(xp, w1, b1r, w2, b2r)

    return y if B_P == B else y[:B]


def init_qnet_params(key, input_size, hidden_size, output_size, dtype=jnp.float32):
    """Torch nn.Linear default init (uniform(-1/sqrt(fan_in), +1/sqrt(fan_in)))."""
    k1, k2, k3, k4 = jax.random.split(key, 4)
    bound1 = 1.0 / (input_size ** 0.5)
    bound2 = 1.0 / (hidden_size ** 0.5)
    # Stored transposed relative to torch ([out, in] -> [in, out]) for x @ W.
    w1 = jax.random.uniform(k1, (input_size, hidden_size), dtype, -bound1, bound1)
    b1 = jax.random.uniform(k2, (hidden_size,), dtype, -bound1, bound1)
    w2 = jax.random.uniform(k3, (hidden_size, output_size), dtype, -bound2, bound2)
    b2 = jax.random.uniform(k4, (output_size,), dtype, -bound2, bound2)
    return w1, b1, w2, b2


def _ref_forward(x, w1, b1, w2, b2):
    return jnp.maximum(x @ w1 + b1[None, :], 0.0) @ w2 + b2[None, :]


if __name__ == "__main__":
    # Snake-game Q-net sizes: 11 -> 32 -> 3.
    input_size, hidden_size, output_size = 11, 32, 3

    key = jax.random.PRNGKey(0)
    kx, kx2, kp = jax.random.split(key, 3)
    w1, b1, w2, b2 = init_qnet_params(kp, input_size, hidden_size, output_size)

    # Small-batch path (grid=(1,), batch padded 4 -> 8).
    x = jax.random.normal(kx, (4, input_size), jnp.float32)
    y = linear_qnet_forward(x, w1, b1, w2, b2)
    jax.block_until_ready(y)
    ref = _ref_forward(x, w1, b1, w2, b2)
    assert y.shape == (4, output_size)
    assert jnp.allclose(y, ref, atol=1e-3, rtol=1e-3), (y, ref)

    # Multi-tile path (exercises batch pipelining / batch padding).
    x2 = jax.random.normal(kx2, (200, input_size), jnp.float32)
    y2 = linear_qnet_forward(x2, w1, b1, w2, b2, block_batch=64)
    jax.block_until_ready(y2)
    ref2 = _ref_forward(x2, w1, b1, w2, b2)
    assert y2.shape == (200, output_size)
    assert jnp.allclose(y2, ref2, atol=1e-3, rtol=1e-3)

    # TODO(synk): save()/load() checkpoint file I/O from the torch module is
    # out of scope for a forward-pass kernel.
    print("KERNEL_OK")
</pallas_src>

<mosaic_0001>
module attributes {stable_mosaic.version = 11 : i64} {
  func.func @_qnet_kernel(%arg0: i32, %arg1: memref<8x11xf32, #tpu.memory_space<vmem>>, %arg2: memref<11x32xf32, #tpu.memory_space<vmem>>, %arg3: memref<1x32xf32, #tpu.memory_space<vmem>>, %arg4: memref<32x3xf32, #tpu.memory_space<vmem>>, %arg5: memref<1x3xf32, #tpu.memory_space<vmem>>, %arg6: memref<8x3xf32, #tpu.memory_space<vmem>>) attributes {dimension_semantics = [#tpu.dimension_semantics<parallel>], iteration_bounds = array<i64: 1>, scalar_prefetch = 0 : i64, scratch_operands = 0 : i64, tpu.core_type = #tpu.core_type<tc>, window_params = [{transform_indices = @transform_0, window_bounds = array<i64: 8, 11>}, {pipeline_mode = #tpu.pipeline_mode<synchronous>, transform_indices = @transform_1, window_bounds = array<i64: 11, 32>}, {pipeline_mode = #tpu.pipeline_mode<synchronous>, transform_indices = @transform_2, window_bounds = array<i64: 1, 32>}, {pipeline_mode = #tpu.pipeline_mode<synchronous>, transform_indices = @transform_3, window_bounds = array<i64: 32, 3>}, {pipeline_mode = #tpu.pipeline_mode<synchronous>, transform_indices = @transform_4, window_bounds = array<i64: 1, 3>}, {transform_indices = @transform_5, window_bounds = array<i64: 8, 3>}]} {
    %c0 = arith.constant 0 : index
    %c0_0 = arith.constant 0 : index
    %0 = vector.load %arg1[%c0, %c0_0] : memref<8x11xf32, #tpu.memory_space<vmem>>, vector<8x11xf32>
    %c0_1 = arith.constant 0 : index
    %c0_2 = arith.constant 0 : index
    %1 = vector.load %arg2[%c0_1, %c0_2] : memref<11x32xf32, #tpu.memory_space<vmem>>, vector<11x32xf32>
    %cst = arith.constant dense<0.000000e+00> : vector<8x32xf32>
    %2 = tpu.matmul %0, %1, %cst {dimension_numbers = #tpu.dot_dimension_numbers<[1], [0], [0], [1], [0, 0, 1, 1], [], []>} : vector<8x11xf32>, vector<11x32xf32>, vector<8x32xf32> -> vector<8x32xf32>
    %c0_3 = arith.constant 0 : index
    %c0_4 = arith.constant 0 : index
    %3 = vector.load %arg3[%c0_3, %c0_4] : memref<1x32xf32, #tpu.memory_space<vmem>>, vector<1x32xf32>
    %4 = vector.broadcast %3 : vector<1x32xf32> to vector<8x32xf32>
    %5 = arith.addf %2, %4 : vector<8x32xf32>
    %cst_5 = arith.constant 0.000000e+00 : f32
    %6 = vector.broadcast %cst_5 : f32 to vector<8x32xf32>
    %7 = arith.maximumf %5, %6 : vector<8x32xf32>
    %c0_6 = arith.constant 0 : index
    %c0_7 = arith.constant 0 : index
    %8 = vector.load %arg4[%c0_6, %c0_7] : memref<32x3xf32, #tpu.memory_space<vmem>>, vector<32x3xf32>
    %cst_8 = arith.constant dense<0.000000e+00> : vector<8x3xf32>
    %9 = tpu.matmul %7, %8, %cst_8 {dimension_numbers = #tpu.dot_dimension_numbers<[1], [0], [0], [1], [0, 0, 1, 1], [], []>} : vector<8x32xf32>, vector<32x3xf32>, vector<8x3xf32> -> vector<8x3xf32>
    %c0_9 = arith.constant 0 : index
    %c0_10 = arith.constant 0 : index
    %10 = vector.load %arg5[%c0_9, %c0_10] : memref<1x3xf32, #tpu.memory_space<vmem>>, vector<1x3xf32>
    %11 = vector.broadcast %10 : vector<1x3xf32> to vector<8x3xf32>
    %12 = arith.addf %9, %11 : vector<8x3xf32>
    %c0_11 = arith.constant 0 : index
    %c0_12 = arith.constant 0 : index
    %13 = vector.load %arg6[%c0_11, %c0_12] : memref<8x3xf32, #tpu.memory_space<vmem>>, vector<8x3xf32>
    tpu.vector_store %arg6[%c0_11, %c0_12], %12 {strides = array<i32>} : memref<8x3xf32, #tpu.memory_space<vmem>>, vector<8x3xf32>,
    return
  }
  func.func @transform_0(%arg0: i32) -> (i32, i32) {
    %c0_i32 = arith.constant 0 : i32
    %c0_i32_0 = arith.constant 0 : i32
    return %arg0, %c0_i32 : i32, i32
  }
  func.func @transform_1(%arg0: i32) -> (i32, i32) {
    %c0_i32 = arith.constant 0 : i32
    %c0_i32_0 = arith.constant 0 : i32
    %c0_i32_1 = arith.constant 0 : i32
    return %c0_i32, %c0_i32_0 : i32, i32
  }
  func.func @transform_2(%arg0: i32) -> (i32, i32) {
    %c0_i32 = arith.constant 0 : i32
    %c0_i32_0 = arith.constant 0 : i32
    %c0_i32_1 = arith.constant 0 : i32
    return %c0_i32, %c0_i32_0 : i32, i32
  }
  func.func @transform_3(%arg0: i32) -> (i32, i32) {
    %c0_i32 = arith.constant 0 : i32
    %c0_i32_0 = arith.constant 0 : i32
    %c0_i32_1 = arith.constant 0 : i32
    return %c0_i32, %c0_i32_0 : i32, i32
  }
  func.func @transform_4(%arg0: i32) -> (i32, i32) {
    %c0_i32 = arith.constant 0 : i32
    %c0_i32_0 = arith.constant 0 : i32
    %c0_i32_1 = arith.constant 0 : i32
    return %c0_i32, %c0_i32_0 : i32, i32
  }
  func.func @transform_5(%arg0: i32) -> (i32, i32) {
    %c0_i32 = arith.constant 0 : i32
    %c0_i32_0 = arith.constant 0 : i32
    return %arg0, %c0_i32 : i32, i32
  }
}

</mosaic_0001>

<bundles_post_ra>
// kernel: linear_qnet_forward.1
= control target key start
LH: loop header
LB: loop body
LE: loop exit
PB: predicated region body
PF: predicated region fallthrough
CT: control target
= control target key end

     0   :  { %vm31_vm0 = vcmask 1042432   ;;  %vm27_vm1 = vcmask 89088   ;;  %vm64_vm2 = vcmask 261120   ;;  %vm88_vm3 = vcmask 23552   ;;  %s159_s1 = inlined_call_operand.vmem [shape: f32[11,32], index: 1, kind: input, shape index: {}]   ;;  %s160_s0 = inlined_call_operand.vmem [shape: f32[8,11], index: 0, kind: input, shape index: {}]   ;;  %s161_s3 = inlined_call_operand.vmem [shape: f32[32,3], index: 3, kind: input, shape index: {}]   ;;  %s162_s2 = inlined_call_operand.vmem [shape: f32[1,32], index: 2, kind: input, shape index: {}]   ;;  %s163_s4 = inlined_call_operand.vmem [shape: f32[1,3], index: 4, kind: input, shape index: {}]   ;;  %s164_s5 = inlined_call_operand.vmem [shape: f32[8,3], index: 5, kind: output, shape index: {}]  }
   0x1   :  { %v22_v0 = vld [vmem:[%s159_s1 + $0x8] sm:$0x7]  ;;  %v21_v1 = vld [vmem:[%s159_s1] sm:$0xff]  ;;  %v59_v3 = vld [vmem:[%s161_s3 + $0x18] sm:$0xff] }
   0x2   :  { %94 = vmatpush.msk.msra.mxu0 %vm31_vm0, %v22_v0  ;;  %v20_v2 = vld [vmem:[%s160_s0] sm:$0xff]  ;;  %80 = vmatpush.msra.mxu1 %v59_v3  ;;  %v58_v4 = vld [vmem:[%s161_s3 + $0x10] sm:$0xff]  ;;  %v57_v5 = vld [vmem:[%s161_s3 + $0x8] sm:$0xff] }
   0x3   :  { %v56_v6 = vld [vmem:[%s161_s3] sm:$0xff] }
   0x4   :  { %50 = vmatpush.msra.mxu0 %v21_v1  ;;  %81 = vmatpush.msra.mxu1 %v58_v4  ;;  %v97_v7 = vld [vmem:[%s162_s2] ss:$0 sm:$0xff] }
   0x5   :  { %95 = vmatmul.msk.f32.vlgmr.msra.gmra.mxu0 %vm27_vm1, %v20_v2  ;;  %v98_v11 = vld [vmem:[%s163_s4] ss:$0 sm:$0xff] }
   0x6   :  { %82 = vmatpush.msra.mxu1 %v57_v5 }
   0x8   :  { %83 = vmatpush.msra.mxu1 %v56_v6 }
  0x82   :  { %v52_v8 = vpop.f32.mrf.mxu0 }
  0x83   :  { %v53_v9 = vadd.f32 %v97_v7, %v52_v8 }
  0x85   :  { %v55_v10 = vmax.f32 %v53_v9, 0.0 }
  0x87   :  { %96 = vmatmul.msk.f32.vlgmr.msra.gmra.mxu1 %vm64_vm2, %v55_v10 }
 0x104   :  { %v85_v12 = vpop.f32.mrf.mxu1 }
 0x105   :  { %v86_v13 = vadd.f32 %v98_v11, %v85_v12 }
 0x107   :  { %89 = vst.msk [vmem:[%s164_s5] sm:$0xff] %vm88_vm3, %v86_v13 }

</bundles_post_ra>
